<compile_context>
chip_gen: v5e
topology: v5e:2x2
jax: 0.10.0
libtpu: 0.0.40
codegen_flags: <defaults>
</compile_context>

<pallas_src>
import functools
import math

import jax
import jax.numpy as jnp
from jax import lax
from jax.experimental import pallas as pl
from jax.experimental.pallas import tpu as pltpu


def _pick_query_block(L):
    """Query-block length: 256-aligned preferred (2x256 MXU on v6e/v7x)."""
    for cand in (256, 512, 128):
        if L % cand == 0:
            return cand
    # TODO(synk): pad L host-side to a multiple of 128 for odd sequence lengths
    # (falling back to tq = L is correct but lane-unaligned / unblocked).
    return L


def _thp_encoder_kernel(x_ref, et_ref, wt_ref, b_ref, out_ref,
                        state_ref, new_state_ref, v_ref, sum_ref,
                        *, tq, inv_temp):
    """Grid = (B, n_head).  The head axis is sequential ("arbitrary"): the
    chained per-head state and the sum-over-heads accumulator live in VMEM
    scratch and persist across the head axis."""
    h = pl.program_id(1)
    n_head = pl.num_programs(1)
    L, D = state_ref.shape
    num_qb = L // tq

    @pl.when(h == 0)
    def _():
        state_ref[...] = x_ref[0].astype(jnp.bfloat16)
        sum_ref[...] = jnp.zeros_like(sum_ref)

    wt = wt_ref[0]                                # (D, D) bf16, already W^T
    bias = b_ref[0]                               # (1, D) f32
    state = state_ref[...]                        # (L, D) bf16 head input (K operand)

    # Value path, hoisted out of the tile sweep: V = ELU(state @ W^T + b).
    lin = jnp.dot(state, wt, preferred_element_type=jnp.float32) + bias
    # Clamp the unselected branch so exp never overflows: ELU (alpha = 1).
    elu = jnp.where(lin > 0, lin, jnp.exp(jnp.minimum(lin, 0.0)) - 1.0)
    v_ref[...] = elu.astype(jnp.bfloat16)

    # slf_attn_mask = (key_pad + subsequent).gt(0); the reference KEEPS those
    # entries (multiplicative bool mask), so we do too.
    pad_keep = (et_ref[0] == 0)                   # (1, L) bool, key positions

    row_l = lax.broadcasted_iota(jnp.int32, (tq, L), 0)
    col_l = lax.broadcasted_iota(jnp.int32, (tq, L), 1)

    def q_block(qb, carry):
        start = qb * tq
        if not isinstance(start, int):            # dynamic start: alignment hint
            start = pl.multiple_of(start, tq)

        q_blk = state_ref[pl.ds(start, tq), :]    # (tq, D) bf16

        # scores: (tq, L) = q_blk @ state^T, contracting the feature dim of
        # both operands (no explicit transpose).  NOTE(perf): if the MLIR dump
        # ever shows a per-block vxpose here, keep a (D, L) state^T scratch.
        s = lax.dot_general(q_blk, state, (((1,), (1,)), ((), ())),
                            preferred_element_type=jnp.float32)
        s = s * jnp.float32(inv_temp)

        keep = pad_keep | (col_l > row_l + start)
        s = jnp.where(keep, s, 0.0)

        # F.normalize(p=2, dim=-1, eps=1e-5): row / max(||row||_2, 1e-5).
        # rsqrt(max(ss, eps^2)) == 1 / max(sqrt(ss), eps); routes to the EUP.
        sumsq = jnp.sum(s * s, axis=-1, keepdims=True)
        inv_norm = lax.rsqrt(jnp.maximum(sumsq, jnp.float32(1e-10)))
        attn = (s * inv_norm).astype(jnp.bfloat16)

        out_blk = jnp.dot(attn, v_ref[...], preferred_element_type=jnp.float32)

        new_state_ref[pl.ds(start, tq), :] = out_blk.astype(jnp.bfloat16)
        sum_ref[pl.ds(start, tq), :] = sum_ref[pl.ds(start, tq), :] + out_blk
        return carry

    if num_qb == 1:
        q_block(0, 0)                              # fully static slices
    else:
        lax.fori_loop(0, num_qb, q_block, 0, unroll=(num_qb <= 8))

    state_ref[...] = new_state_ref[...]            # chained into next head

    @pl.when(h == n_head - 1)
    def _():
        out_ref[0] = sum_ref[...].astype(out_ref.dtype)


def thp_encoder_forward(x, event_type, weights, biases):
    """x: (B, L, D) f32; event_type: (B, L) int32 (PAD == 0);
    weights: (n_head, D, D) torch Linear convention (out, in); biases: (n_head, D)."""
    B, L, D = x.shape
    n_head = weights.shape[0]
    tq = _pick_query_block(L)
    inv_temp = 1.0 / math.sqrt(D)

    # Host-side prep: pre-transpose weights (drop the in-kernel .T) and cast to
    # bf16 MXU operands; biases stay f32; event_type made >=2D for VMEM.
    wt = jnp.transpose(weights, (0, 2, 1)).astype(jnp.bfloat16)
    b3 = biases.reshape(n_head, 1, D).astype(jnp.float32)
    et3 = event_type.reshape(B, 1, L).astype(jnp.int32)

    kernel = functools.partial(_thp_encoder_kernel, tq=tq, inv_temp=inv_temp)

    # VMEM budget: double-buffered pipelined blocks, SINGLE-buffered scratch,
    # plus in-kernel temporaries (score block, lin/elu, out block).
    blocks = 2 * (L * D * 4        # x block
                  + L * 4          # event_type block
                  + D * D * 2      # per-head W^T (bf16)
                  + D * 4          # per-head bias
                  + L * D * 4)     # output block
    scratch = 3 * L * D * 2 + L * D * 4       # state, new_state, V (bf16) + sum (f32)
    temps = 2 * tq * L * 4 + 2 * L * D * 4 + tq * D * 4
    est = blocks + scratch + temps

    try:
        cap = pltpu.get_tpu_info().vmem_capacity_bytes
    except Exception:  # pragma: no cover - conservative fallback (v7x size)
        cap = 64 * 1024 * 1024
    vmem_limit = int(max(16 * 1024 * 1024,
                         min(cap - 8 * 1024 * 1024,
                             max(32 * 1024 * 1024, int(1.5 * est)))))

    return pl.pallas_call(
        kernel,
        out_shape=jax.ShapeDtypeStruct((B, L, D), jnp.float32),
        grid_spec=pltpu.PrefetchScalarGridSpec(
            num_scalar_prefetch=0,
            grid=(B, n_head),
            in_specs=[
                pl.BlockSpec((1, L, D), lambda b, h: (b, 0, 0)),   # x (per batch)
                pl.BlockSpec((1, 1, L), lambda b, h: (b, 0, 0)),   # event_type
                pl.BlockSpec((1, D, D), lambda b, h: (h, 0, 0)),   # W^T (per head)
                pl.BlockSpec((1, 1, D), lambda b, h: (h, 0, 0)),   # bias (per head)
            ],
            out_specs=pl.BlockSpec((1, L, D), lambda b, h: (b, 0, 0)),
            scratch_shapes=[
                pltpu.VMEM((L, D), jnp.bfloat16),   # chained head state (K / linear input)
                pltpu.VMEM((L, D), jnp.bfloat16),   # next head state (written during sweep)
                pltpu.VMEM((L, D), jnp.bfloat16),   # V = ELU(state @ W^T + b)
                pltpu.VMEM((L, D), jnp.float32),    # sum-over-heads accumulator
            ],
        ),
        compiler_params=pltpu.CompilerParams(
            dimension_semantics=("parallel", "arbitrary"),
            vmem_limit_bytes=vmem_limit),
    )(x, et3, wt, b3)


def _build_slf_attn_mask(event_type, seq_len):
    """(get_attn_key_pad_mask + get_subsequent_mask).gt(0), PAD == 0, as float."""
    pad_mask = (event_type == 0)[:, None, :]                                  # (B, 1, L)
    subseq = jnp.triu(jnp.ones((seq_len, seq_len), dtype=bool), k=1)[None]    # (1, L, L)
    return (pad_mask | subseq).astype(jnp.float32)                            # (B, L, L)


def thp_encoder_reference(x, event_type, weights, biases):
    """Pure-JAX f32 reference mirroring the PyTorch forward."""
    B, L, D = x.shape
    mask = _build_slf_attn_mask(event_type, L)
    temperature = D ** 0.5
    out = x
    acc = jnp.zeros_like(x)
    for h in range(weights.shape[0]):
        lin = out @ weights[h].T + biases[h]
        elu = jnp.where(lin > 0, lin, jnp.exp(jnp.minimum(lin, 0.0)) - 1.0)
        scores = (out / temperature) @ jnp.swapaxes(out, 1, 2) * mask
        norm = jnp.sqrt(jnp.sum(scores * scores, axis=-1, keepdims=True))
        attn = scores / jnp.maximum(norm, 1e-5)
        out = attn @ elu
        acc = acc + out
    return acc


if __name__ == "__main__":
    B, L, D, N_HEAD = 2, 8, 32, 2

    key = jax.random.PRNGKey(0)
    kx, kw, kb, ke = jax.random.split(key, 4)

    x = jax.random.normal(kx, (B, L, D), dtype=jnp.float32)

    # xavier_uniform for each head's Linear weight; PyTorch default bias init.
    xav_bound = math.sqrt(6.0 / (D + D))
    weights = jax.random.uniform(kw, (N_HEAD, D, D), jnp.float32,
                                 -xav_bound, xav_bound)
    b_bound = 1.0 / math.sqrt(D)
    biases = jax.random.uniform(kb, (N_HEAD, D), jnp.float32,
                                -b_bound, b_bound)

    # event types with some padding (PAD == 0) in the tail of each sequence.
    event_type = jax.random.randint(ke, (B, L), 1, 5, dtype=jnp.int32)
    event_type = event_type.at[0, -2:].set(0).at[1, -1:].set(0)

    out = thp_encoder_forward(x, event_type, weights, biases)
    out = jax.block_until_ready(out)

    ref = jax.block_until_ready(
        thp_encoder_reference(x, event_type, weights, biases))
    assert out.shape == (B, L, D)
    # bf16 MXU operands / bf16 chained state (f32 accumulation) across two
    # chained heads -> ~1e-3 relative error per matmul; 2e-2 gives margin.
    assert jnp.allclose(out, ref, rtol=2e-2, atol=2e-2), "mismatch vs reference"

    print("KERNEL_OK")
</pallas_src>

<mosaic_0001>
module attributes {stable_mosaic.version = 11 : i64} {
  func.func @_thp_encoder_kernel(%arg0: i32, %arg1: i32, %arg2: memref<1x8x32xf32, #tpu.memory_space<vmem>>, %arg3: memref<1x1x8xi32, #tpu.memory_space<vmem>>, %arg4: memref<1x32x32xbf16, #tpu.memory_space<vmem>>, %arg5: memref<1x1x32xf32, #tpu.memory_space<vmem>>, %arg6: memref<1x8x32xf32, #tpu.memory_space<vmem>>, %arg7: memref<8x32xbf16, #tpu.memory_space<vmem>>, %arg8: memref<8x32xbf16, #tpu.memory_space<vmem>>, %arg9: memref<8x32xbf16, #tpu.memory_space<vmem>>, %arg10: memref<8x32xf32, #tpu.memory_space<vmem>>) attributes {dimension_semantics = [#tpu.dimension_semantics<parallel>, #tpu.dimension_semantics<arbitrary>], iteration_bounds = array<i64: 2, 2>, scalar_prefetch = 0 : i64, scratch_operands = 4 : i64, tpu.core_type = #tpu.core_type<tc>, window_params = [{transform_indices = @transform_0, window_bounds = array<i64: 1, 8, 32>}, {transform_indices = @transform_1, window_bounds = array<i64: 1, 1, 8>}, {transform_indices = @transform_2, window_bounds = array<i64: 1, 32, 32>}, {transform_indices = @transform_3, window_bounds = array<i64: 1, 1, 32>}, {transform_indices = @transform_4, window_bounds = array<i64: 1, 8, 32>}]} {
    %c0_i32 = arith.constant 0 : i32
    %0 = arith.cmpi eq, %arg1, %c0_i32 : i32
    %1 = arith.extui %0 : i1 to i32
    %c0_i32_0 = arith.constant 0 : i32
    %2 = arith.cmpi ne, %1, %c0_i32_0 : i32
    scf.if %2 {
      %c0_39 = arith.constant 0 : index
      %c0_40 = arith.constant 0 : index
      %c0_41 = arith.constant 0 : index
      %59 = vector.load %arg2[%c0_39, %c0_40, %c0_41] : memref<1x8x32xf32, #tpu.memory_space<vmem>>, vector<1x8x32xf32>
      %60 = vector.shape_cast %59 : vector<1x8x32xf32> to vector<8x32xf32>
      %61 = arith.truncf %60 : vector<8x32xf32> to vector<8x32xbf16>
      %c0_42 = arith.constant 0 : index
      %c0_43 = arith.constant 0 : index
      %62 = vector.load %arg7[%c0_42, %c0_43] : memref<8x32xbf16, #tpu.memory_space<vmem>>, vector<8x32xbf16>
      tpu.vector_store %arg7[%c0_42, %c0_43], %61 {strides = array<i32>} : memref<8x32xbf16, #tpu.memory_space<vmem>>, vector<8x32xbf16>,
      %cst_44 = arith.constant 0.000000e+00 : f32
      %63 = vector.broadcast %cst_44 : f32 to vector<8x32xf32>
      %c0_45 = arith.constant 0 : index
      %c0_46 = arith.constant 0 : index
      %64 = vector.load %arg10[%c0_45, %c0_46] : memref<8x32xf32, #tpu.memory_space<vmem>>, vector<8x32xf32>
      tpu.vector_store %arg10[%c0_45, %c0_46], %63 {strides = array<i32>} : memref<8x32xf32, #tpu.memory_space<vmem>>, vector<8x32xf32>,
    } else {
    }
    %c0 = arith.constant 0 : index
    %c0_1 = arith.constant 0 : index
    %c0_2 = arith.constant 0 : index
    %3 = vector.load %arg4[%c0, %c0_1, %c0_2] : memref<1x32x32xbf16, #tpu.memory_space<vmem>>, vector<1x32x32xbf16>
    %4 = vector.shape_cast %3 : vector<1x32x32xbf16> to vector<32x32xbf16>
    %c0_3 = arith.constant 0 : index
    %c0_4 = arith.constant 0 : index
    %c0_5 = arith.constant 0 : index
    %5 = vector.load %arg5[%c0_3, %c0_4, %c0_5] : memref<1x1x32xf32, #tpu.memory_space<vmem>>, vector<1x1x32xf32>
    %6 = vector.shape_cast %5 : vector<1x1x32xf32> to vector<1x32xf32>
    %c0_6 = arith.constant 0 : index
    %c0_7 = arith.constant 0 : index
    %7 = vector.load %arg7[%c0_6, %c0_7] : memref<8x32xbf16, #tpu.memory_space<vmem>>, vector<8x32xbf16>
    %cst = arith.constant dense<0.000000e+00> : vector<8x32xf32>
    %8 = tpu.matmul %7, %4, %cst {dimension_numbers = #tpu.dot_dimension_numbers<[1], [0], [0], [1], [0, 0, 1, 1], [], []>} : vector<8x32xbf16>, vector<32x32xbf16>, vector<8x32xf32> -> vector<8x32xf32>
    %9 = vector.broadcast %6 : vector<1x32xf32> to vector<8x32xf32>
    %10 = arith.addf %8, %9 : vector<8x32xf32>
    %cst_8 = arith.constant 0.000000e+00 : f32
    %11 = vector.broadcast %cst_8 : f32 to vector<8x32xf32>
    %12 = arith.cmpf ogt, %10, %11 : vector<8x32xf32>
    %cst_9 = arith.constant 0.000000e+00 : f32
    %13 = vector.broadcast %cst_9 : f32 to vector<8x32xf32>
    %14 = arith.minimumf %10, %13 : vector<8x32xf32>
    %15 = math.exp %14 : vector<8x32xf32>
    %cst_10 = arith.constant 1.000000e+00 : f32
    %16 = vector.broadcast %cst_10 : f32 to vector<8x32xf32>
    %17 = arith.subf %15, %16 : vector<8x32xf32>
    %18 = arith.select %12, %10, %17 : vector<8x32xi1>, vector<8x32xf32>
    %19 = arith.truncf %18 : vector<8x32xf32> to vector<8x32xbf16>
    %c0_11 = arith.constant 0 : index
    %c0_12 = arith.constant 0 : index
    %20 = vector.load %arg9[%c0_11, %c0_12] : memref<8x32xbf16, #tpu.memory_space<vmem>>, vector<8x32xbf16>
    tpu.vector_store %arg9[%c0_11, %c0_12], %19 {strides = array<i32>} : memref<8x32xbf16, #tpu.memory_space<vmem>>, vector<8x32xbf16>,
    %c0_13 = arith.constant 0 : index
    %c0_14 = arith.constant 0 : index
    %c0_15 = arith.constant 0 : index
    %21 = vector.load %arg3[%c0_13, %c0_14, %c0_15] : memref<1x1x8xi32, #tpu.memory_space<vmem>>, vector<1x1x8xi32>
    %22 = vector.shape_cast %21 : vector<1x1x8xi32> to vector<1x8xi32>
    %c0_i32_16 = arith.constant 0 : i32
    %23 = vector.broadcast %c0_i32_16 : i32 to vector<1x8xi32>
    %24 = arith.cmpi eq, %22, %23 : vector<1x8xi32>
    %25 = tpu.iota {dimensions = array<i32: 0>} : vector<8x8xi32>
    %26 = tpu.iota {dimensions = array<i32: 1>} : vector<8x8xi32>
    %c0_17 = arith.constant 0 : index
    %c0_18 = arith.constant 0 : index
    %27 = vector.load %arg7[%c0_17, %c0_18] : memref<8x32xbf16, #tpu.memory_space<vmem>>, vector<8x32xbf16>
    %cst_19 = arith.constant dense<0.000000e+00> : vector<8x8xf32>
    %28 = tpu.matmul %27, %7, %cst_19 {dimension_numbers = #tpu.dot_dimension_numbers<[1], [1], [0], [0], [0, 0, 1, 0], [], []>} : vector<8x32xbf16>, vector<8x32xbf16>, vector<8x8xf32> -> vector<8x8xf32>
    %cst_20 = arith.constant 0.176776692 : f32
    %29 = vector.broadcast %cst_20 : f32 to vector<8x8xf32>
    %30 = arith.mulf %28, %29 : vector<8x8xf32>
    %c0_i32_21 = arith.constant 0 : i32
    %31 = vector.broadcast %c0_i32_21 : i32 to vector<8x8xi32>
    %32 = arith.addi %25, %31 : vector<8x8xi32>
    %33 = arith.cmpi sgt, %26, %32 : vector<8x8xi32>
    %34 = vector.broadcast %24 : vector<1x8xi1> to vector<8x8xi1>
    %35 = arith.ori %34, %33 : vector<8x8xi1>
    %cst_22 = arith.constant 0.000000e+00 : f32
    %36 = vector.broadcast %cst_22 : f32 to vector<8x8xf32>
    %37 = arith.select %35, %30, %36 : vector<8x8xi1>, vector<8x8xf32>
    %38 = arith.mulf %37, %37 : vector<8x8xf32>
    %cst_23 = arith.constant dense<0.000000e+00> : vector<8xf32>
    %39 = vector.multi_reduction <add>, %38, %cst_23 [1] : vector<8x8xf32> to vector<8xf32>
    %40 = vector.shape_cast %39 : vector<8xf32> to vector<8x1xf32>
    %cst_24 = arith.constant 1.000000e-10 : f32
    %41 = vector.broadcast %cst_24 : f32 to vector<8x1xf32>
    %42 = arith.maximumf %40, %41 : vector<8x1xf32>
    %43 = math.rsqrt %42 : vector<8x1xf32>
    %44 = vector.broadcast %43 : vector<8x1xf32> to vector<8x8xf32>
    %45 = arith.mulf %37, %44 : vector<8x8xf32>
    %46 = arith.truncf %45 : vector<8x8xf32> to vector<8x8xbf16>
    %c0_25 = arith.constant 0 : index
    %c0_26 = arith.constant 0 : index
    %47 = vector.load %arg9[%c0_25, %c0_26] : memref<8x32xbf16, #tpu.memory_space<vmem>>, vector<8x32xbf16>
    %cst_27 = arith.constant dense<0.000000e+00> : vector<8x32xf32>
    %48 = tpu.matmul %46, %47, %cst_27 {dimension_numbers = #tpu.dot_dimension_numbers<[1], [0], [0], [1], [0, 0, 1, 1], [], []>} : vector<8x8xbf16>, vector<8x32xbf16>, vector<8x32xf32> -> vector<8x32xf32>
    %49 = arith.truncf %48 : vector<8x32xf32> to vector<8x32xbf16>
    %c0_28 = arith.constant 0 : index
    %c0_29 = arith.constant 0 : index
    %50 = vector.load %arg8[%c0_28, %c0_29] : memref<8x32xbf16, #tpu.memory_space<vmem>>, vector<8x32xbf16>
    tpu.vector_store %arg8[%c0_28, %c0_29], %49 {strides = array<i32>} : memref<8x32xbf16, #tpu.memory_space<vmem>>, vector<8x32xbf16>,
    %c0_30 = arith.constant 0 : index
    %c0_31 = arith.constant 0 : index
    %51 = vector.load %arg10[%c0_30, %c0_31] : memref<8x32xf32, #tpu.memory_space<vmem>>, vector<8x32xf32>
    %52 = arith.addf %51, %48 : vector<8x32xf32>
    %c0_32 = arith.constant 0 : index
    %c0_33 = arith.constant 0 : index
    %53 = vector.load %arg10[%c0_32, %c0_33] : memref<8x32xf32, #tpu.memory_space<vmem>>, vector<8x32xf32>
    tpu.vector_store %arg10[%c0_32, %c0_33], %52 {strides = array<i32>} : memref<8x32xf32, #tpu.memory_space<vmem>>, vector<8x32xf32>,
    %c0_34 = arith.constant 0 : index
    %c0_35 = arith.constant 0 : index
    %54 = vector.load %arg8[%c0_34, %c0_35] : memref<8x32xbf16, #tpu.memory_space<vmem>>, vector<8x32xbf16>
    %c0_36 = arith.constant 0 : index
    %c0_37 = arith.constant 0 : index
    %55 = vector.load %arg7[%c0_36, %c0_37] : memref<8x32xbf16, #tpu.memory_space<vmem>>, vector<8x32xbf16>
    tpu.vector_store %arg7[%c0_36, %c0_37], %54 {strides = array<i32>} : memref<8x32xbf16, #tpu.memory_space<vmem>>, vector<8x32xbf16>,
    %c1_i32 = arith.constant 1 : i32
    %56 = arith.cmpi eq, %arg1, %c1_i32 : i32
    %57 = arith.extui %56 : i1 to i32
    %c0_i32_38 = arith.constant 0 : i32
    %58 = arith.cmpi ne, %57, %c0_i32_38 : i32
    scf.if %58 {
      %c0_39 = arith.constant 0 : index
      %c0_40 = arith.constant 0 : index
      %59 = vector.load %arg10[%c0_39, %c0_40] : memref<8x32xf32, #tpu.memory_space<vmem>>, vector<8x32xf32>
      %c0_41 = arith.constant 0 : index
      %c0_42 = arith.constant 0 : index
      %c0_43 = arith.constant 0 : index
      %60 = vector.load %arg6[%c0_41, %c0_42, %c0_43] : memref<1x8x32xf32, #tpu.memory_space<vmem>>, vector<1x8x32xf32>
      %61 = vector.shape_cast %60 : vector<1x8x32xf32> to vector<8x32xf32>
      %62 = vector.shape_cast %59 : vector<8x32xf32> to vector<1x8x32xf32>
      tpu.vector_store %arg6[%c0_41, %c0_42, %c0_43], %62 {strides = array<i32>} : memref<1x8x32xf32, #tpu.memory_space<vmem>>, vector<1x8x32xf32>,
    } else {
    }
    return
  }
  func.func @transform_0(%arg0: i32, %arg1: i32) -> (i32, i32, i32) {
    %c0_i32 = arith.constant 0 : i32
    %c0_i32_0 = arith.constant 0 : i32
    %c0_i32_1 = arith.constant 0 : i32
    return %arg0, %c0_i32, %c0_i32_0 : i32, i32, i32
  }
  func.func @transform_1(%arg0: i32, %arg1: i32) -> (i32, i32, i32) {
    %c0_i32 = arith.constant 0 : i32
    %c0_i32_0 = arith.constant 0 : i32
    %c0_i32_1 = arith.constant 0 : i32
    return %arg0, %c0_i32, %c0_i32_0 : i32, i32, i32
  }
  func.func @transform_2(%arg0: i32, %arg1: i32) -> (i32, i32, i32) {
    %c0_i32 = arith.constant 0 : i32
    %c0_i32_0 = arith.constant 0 : i32
    %c0_i32_1 = arith.constant 0 : i32
    return %arg1, %c0_i32, %c0_i32_0 : i32, i32, i32
  }
  func.func @transform_3(%arg0: i32, %arg1: i32) -> (i32, i32, i32) {
    %c0_i32 = arith.constant 0 : i32
    %c0_i32_0 = arith.constant 0 : i32
    %c0_i32_1 = arith.constant 0 : i32
    return %arg1, %c0_i32, %c0_i32_0 : i32, i32, i32
  }
  func.func @transform_4(%arg0: i32, %arg1: i32) -> (i32, i32, i32) {
    %c0_i32 = arith.constant 0 : i32
    %c0_i32_0 = arith.constant 0 : i32
    %c0_i32_1 = arith.constant 0 : i32
    return %arg0, %c0_i32, %c0_i32_0 : i32, i32, i32
  }
}

</mosaic_0001>

<bundles_post_ra>
// kernel: tpu_custom_call.1
= control target key start
LH: loop header
LB: loop body
LE: loop exit
PB: predicated region body
PF: predicated region fallthrough
CT: control target
= control target key end

     0   :  { %s1288_s0 = inlined_call_operand.hbm [shape: f32[2,8,32], index: 0, kind: input, shape index: {}]   ;;  %s1289_s1 = inlined_call_operand.hbm [shape: s32[2,1,8], index: 1, kind: input, shape index: {}]   ;;  %s1290_s2 = inlined_call_operand.hbm [shape: bf16[2,32,32], index: 2, kind: input, shape index: {}]   ;;  %s1291_s3 = inlined_call_operand.vmem [shape: f32[2,1,32], index: 3, kind: input, shape index: {}]   ;;  %s1292_s4 = inlined_call_operand.hbm [shape: f32[2,8,32], index: 4, kind: output, shape index: {}]  }
   0x1   :  { %1305 = sst [smem:[#allocation28_spill]] %s1289_s1 }
   0x2   :  { %1306 = sst [smem:[#allocation29_spill]] %s1291_s3 }
   0x3   :  { %1307 = sst [smem:[#allocation30_spill]] %s1292_s4 }
   0x4   :  { %9 = vsyncpa [#allocation7], 0 }
   0x5   :  { %11 = vsyncpa [#allocation7 + $0x1], 0 }
   0x6   :  { %12 = vsyncpa [#allocation10], 0 }
   0x7   :  { %14 = vsyncpa [#allocation10 + $0x1], 0 }
   0x8   :  { %15 = vsyncpa [#allocation8], 0 }
   0x9   :  { %17 = vsyncpa [#allocation8 + $0x1], 0  ;;  %s1006_s15 = smov 0   ;;  %s1008_s16 = smov 0  }
   0xa   :  { %s1010_s17 = smov 0   ;;  %s1012_s18 = smov 0  }
   0xb   :  { %s1014_s19 = smov 0   ;;  %s1016_s20 = smov 0  }
   0xc   :  { %s1018_s21 = smov 0   ;;  %s1020_s22 = smov 0  }
   0xd   :  { %s1022_s23 = smov 0   ;;  %s1024_s24 = smov 0  }
   0xe   :  { %s1026_s25 = smov 0  }
   0xf LB: > { %1308 = sst [smem:[#allocation17_spill]] %s947_s18  ;;  %s1062_s26 = sadd.s32 4294967295, %s975_s25   ;;  %s975_s25 = sphi %s1026_s25, %s23_s25   ;;  %s971_s24 = sphi %s1024_s24, %s1344_s24   ;;  %s967_s23 = sphi %s1022_s23, %s1351_s23   ;;  %s963_s22 = sphi %s1020_s22, %s1342_s22   ;;  %s959_s21 = sphi %s1018_s21, %s1350_s21   ;;  %s955_s20 = sphi %s1016_s20, %s1341_s20   ;;  %s951_s19 = sphi %s1014_s19, %s1349_s19   ;;  %s947_s18 = sphi %s1012_s18, %s1348_s18   ;;  %s943_s17 = sphi %s1010_s17, %s1347_s17   ;;  %s939_s16 = sphi %s1008_s16, %s1346_s16   ;;  %s935_s15 = sphi %s1006_s15, %s1345_s15  }
  0x10   : > { %1309 = sst [smem:[#allocation18_spill]] %s955_s20  ;;  %s601_s27 = sadd.s32 4294967294, %s975_s25  }
  0x11   : > { %1310 = sst [smem:[#allocation19_spill]] %s963_s22  ;;  %s32_s28 = sadd.s32 1, %s967_s23 }
  0x12   : > { %1311 = sst [smem:[#allocation20_spill]] %s971_s24  ;;  %s35_s29 = sadd.s32 1, %s971_s24 }
  0x13   : > { %1312 = sst [smem:[#allocation21_spill]] %s975_s25  ;;  %p33_p0 = scmp.ge.s32.totalorder %s32_s28, 2 }
  0x14   : > { %s42_s30 = sadd.s32 1, %s955_s20  ;;  %p49_p1 = scmp.ne.s32.totalorder %s955_s20, %s951_s19 }
  0x15   : > { %p50_p2 = scmp.eq.s32.totalorder %s975_s25, 0  ;;  %s1353_s28 = smov (%p33_p0, %s32_s28), 0 }
  0x16   : > { %1313 = sst [smem:[#allocation22_spill]] %s1353_s28  ;;  %s1355_s29 = smov (!%p33_p0, %s35_s29), %s971_s24 }
  0x17   : > { %p1079_p3 = por %p50_p2, %p49_p1  ;;  %p1293_p4 = scmp.ne.s32.totalorder %s951_s19, %s947_s18 }
  0x18   : > { %p37_p5 = scmp.ge.s32.totalorder %s1355_s29, 2  ;;  %p56_p6 = scmp.eq.s32.totalorder %s1062_s26, 0 }
  0x19   : > { %s91_s6 = ssub.s32 %s967_s23, %s1353_s28  ;;  %s94_s7 = sadd.s32 1, %s943_s17 }
  0x1a   : > { %s1357_s29 = smov (%p37_p5, %s1355_s29), 0  ;;  %p1096_p7 = por %p56_p6, %p1293_p4 }
  0x1b   : > { %1315 = sst [smem:[#allocation23_spill]] %s1357_s29  ;;  %p92_p8 = scmp.eq.s32.totalorder %s91_s6, 0 }
  0x1c   : > { %s39_s9 = ssub.s32 %s971_s24, %s1357_s29  ;;  %p101_p9 = scmp.ne.s32.totalorder %s943_s17, %s939_s16 }
  0x1d   : > { %p40_p10 = scmp.eq.s32.totalorder %s39_s9, 0  ;;  %p107_p11 = scmp.ne.s32.totalorder %s939_s16, %s935_s15 }
  0x1e   : > { %s1107_s10 = scalar_select %p92_p8, %s943_s17, %s94_s7  }
  0x1f   : > { %s1110_s11 = scalar_select %p40_p10, %s955_s20, %s42_s30  }
  0x20   : > { %1317 = sst [smem:[#allocation24_spill]] %s1107_s10  ;;  %p1114_p12 = por %p101_p9, %p50_p2 }
  0x21   : > { %1318 = sst [smem:[#allocation25_spill]] %s1110_s11  ;;  %p1120_p13 = por %p107_p11, %p56_p6 }
  0x22   : > { %p157_p0 = scmp.eq.s32.totalorder %s1062_s26, 3  ;;  %p163_p5 = scmp.eq.s32.totalorder %s601_s27, 3 }
  0x23   : > { %p656_p4 = scmp.lt.s32.totalorder %s975_s25, 4  ;;  %p1323_p2 = scmp.ne.s32.totalorder %s951_s19, %s947_s18 }
  0x24   : > { %p1129_p8 = por %p157_p0, %p49_p1  ;;  %s183_s30 = sand.u32 1, %s955_s20  }
  0x25   : > { %p1136_p9 = por %p163_p5, %p1323_p2  ;;  %p1143_p6 = pnand %p656_p4, %p1079_p3 }
  0x26   : > { %s1321_s14 = scalar_select %p1129_p8, 1, 0 }
  0x27   : > { %s1324_s15 = scalar_select %p1136_p9, 1, 0 }
  0x28   : > { %1322 = sst [smem:[#allocation26_spill]] %s1321_s14  ;;  %s202_s27 = sand.u32 1, %s975_s25  }
  0x29   : > { %1325 = sst [smem:[#allocation27_spill]] %s1324_s15  ;;  %s205_s28 = scalar_lea.vmem [#allocation9], %s183_s30 }
  0x2a   : > { %s1327_s1 = sld [smem:[#allocation28_spill]]  ;;  %s212_s11 = sshll.u32 %s205_s28, 4  ;;  %s213_s11 = int_to_ptr.vmem [resolvable:$true] %s212_s11 }
  0x2b   : > { %p1154_p1 = pnand %p656_p4, %p1114_p12  ;;  %s1158_s20 = scalar_lea.sflag [#allocation10], %s202_s27 }
  0x2c   : > { %p609_p3 = scmp.ge.s32.totalorder %s975_s25, 1  ;;  %p245_p10 = scmp.lt.s32.totalorder %s975_s25, 5 }
  0x2d   : > { %s605_s7 = sshll.u32 %s971_s24, 3  ;;  %s631_s4 = sshll.u32 %s967_s23, 4 }
  0x2e   : > { %p1165_p11 = pnand %p609_p3, %p245_p10 }
  0x30   : > { %s208_s29 = scalar_lea.hbm %s1327_s1, %s971_s24  ;;  %s191_s1 = scalar_lea.hbm %s1288_s0, %s605_s7 }
  0x31   : > { %s210_s10 = sshll.u32 %s208_s29, 4  ;;  %s604_s29 = sshll.u32 %s183_s30, 3  ;;  %s211_s10 = int_to_ptr.hbm [resolvable:$true] %s210_s10 }
  0x32   : > { %648 = dma.hbm_to_vmem [thread:$0]  (!%p1143_p6), %s211_s10, 16, %s213_s11, %s1158_s20  }
  0x33   : > { %s187_s15 = scalar_lea.vmem [#allocation6], %s604_s29  ;;  %s193_s27 = sshll.u32 %s191_s1, 4  ;;  %s194_s27 = int_to_ptr.hbm [resolvable:$true] %s193_s27 }
  0x34   : > { %s195_s18 = sshll.u32 %s187_s15, 4  ;;  %s221_s10 = sand.u32 1, %s943_s17   ;;  %s196_s18 = int_to_ptr.vmem [resolvable:$true] %s195_s18 }
  0x35   : > { %s184_s11 = scalar_lea.sflag [#allocation7], %s183_s30  ;;  %s606_s25 = sshll.u32 %s221_s10, 4 }
  0x36   : > { %645 = dma.hbm_to_vmem [thread:$0]  (!%p1143_p6), %s194_s27, 128, %s196_s18, %s184_s11  }
  0x37   : > { %s228_s24 = scalar_lea.hbm %s1290_s2, %s631_s4  ;;  %s223_s12 = scalar_lea.vmem [#allocation11], %s606_s25 }
  0x38   : > { %s229_s3 = sshll.u32 %s228_s24, 4  ;;  %s231_s7 = sshll.u32 %s223_s12, 4  ;;  %s230_s3 = int_to_ptr.hbm [resolvable:$true] %s229_s3  ;;  %s232_s7 = int_to_ptr.vmem [resolvable:$true] %s231_s7 }
  0x39   : > { %s977_s1 = smov 64   ;;  %s978_s15 = smov 4  }
  0x3a   : > { %651 = dma.hbm_to_vmem [thread:$0]  (!%p1154_p1), %s230_s3, 256, %s232_s7, %s1158_s20, %s977_s1, %s977_s1, %s978_s15  }
  0x3b   : > { %249 = sbr.rel (%p1165_p11) target bundleno = 537 (0x219), region = 36  ;;  %s1186_s18 = sand.u32 (!%p1165_p11), 1, %s951_s19  }
  0x3c   : > { %s610_s22 = sshll.u32 (!%p1165_p11), %s1186_s18, 3  ;;  %s252_s4 = scalar_lea.sflag (!%p1165_p11), [#allocation7], %s1186_s18 }
  0x3d   : > { %s255_s24 = scalar_lea.vmem (!%p1165_p11), [#allocation6], %s610_s22 }
  0x40   : > { %918 = dma.done.wait (%p1096_p7), %s252_s4, 128  }
  0x41   : > { %920 = vsyncadd (%p1096_p7), %s252_s4, 4294967168  ;;  %s261_s3 = sand.u32 1, %s1062_s26   ;;  %s264_s25 = scalar_lea.vmem [#allocation9], %s1186_s18 }
  0x42   : > { %s262_s20 = scalar_lea.sflag [#allocation10], %s261_s3 }
  0x43   : > { %922 = dma.done.wait (%p1096_p7), %s262_s20, 16  }
  0x44   : > { %924 = vsyncadd (%p1096_p7), %s262_s20, 4294967280  ;;  %s272_s14 = sand.u32 1, %s939_s16  }
  0x45   : > { %s611_s30 = sshll.u32 %s272_s14, 4 }
  0x46   : > { %s274_s6 = scalar_lea.vmem [#allocation11], %s611_s30 }
  0x47   : > { %926 = dma.done.wait (%p1120_p13), %s262_s20, 256  }
  0x48   : > { %928 = vsyncadd (%p1120_p13), %s262_s20, 4294967040  ;;  %p312_p4 = scmp.lt.s32.totalorder %s959_s21, 1  ;;  %s1330_s8 = sld [smem:[#allocation29_spill]] }
  0x49   : > { %s1213_s9 = scalar_lea.vmem [#allocation12], %s610_s22  ;;  %p613_p7 = scmp.ne.s32.totalorder %s959_s21, 0 }
  0x4a   : > { %s1207_s26 = scalar_select %p312_p4, %s959_s21, 1 }
  0x4b   : > { %319 = sbr.rel (%p613_p7) target bundleno = 84 (0x54), region = 52 }
  0x4e   : > { %s314_s29 = scalar_lea.vmem %s1330_s8, %s1207_s26 }
  0x50   : > { %v320_v0 = vld [vmem:[%s255_s24] sm:$0xff]  ;;  %vm322_vm0 = vcmask 257024   ;;  %vm324_vm1 = vcmask 261120   ;;  %v979_v2 = vmov 0.0  }
  0x51   : > { %v321_v1 = vpack.c.bf16 %v320_v0, %v320_v0  ;;  %325 = vst.msk [vmem:[#allocation5] sm:$0xff] %vm324_vm1, %v979_v2 }
  0x53   : > { %323 = vst.msk [vmem:[#allocation2] sm:$0xf] %vm322_vm0, %v321_v1 }
  0x54 PF: > { %vm347_vm2 = vcmask 261120   ;;  %v633_v4 = vld [vmem:[%s274_s6 + $0x8] sm:$0xff]  ;;  %v632_v6 = vld [vmem:[%s274_s6] sm:$0xff]  ;;  %v375_v9 = vlaneseq  ;;  %v980_v10 = vmov 0   ;;  %vm404_vm7 = vcmask 64512   ;;  %p626_p12 = scmp.ne.s32.totalorder %s959_s21, 1 }
  0x55   : > { %357 = vmatpush.bf16.msra.mxu0 %v633_v4  ;;  %v373_v8 = vld [vmem:[%s264_s25] sm:$0x1]  ;;  %vm371_vm9 = vcmask 257024   ;;  %vm425_vm10 = vcmask 1043456  }
  0x56   : > { %vm374_vm3 = vcmp.eq.s32.totalorder %v373_v8, 0  ;;  %v376_v12 = vshrl.u32 %v375_v9, 7  ;;  %v378_v13 = vand.u32 127, %v375_v9  ;;  %v750_v15 = vld [vmem:[%s314_s29] ss:$0 sm:$0xff] }
  0x57   : > { %v398_v11 = vsel %vm374_vm3, 1, %v980_v10 }
  0x58   : > { %v399_v14 = vperm.slane %v398_v11, 0  ;;  %vm397_vm4 = vcmp.gt.s32.totalorder %v378_v13, %v376_v12  ;;  %v444_v44 = vld [vmem:[#allocation5] sm:$0xff] }
  0x59   : > { %358 = vmatpush.bf16.msra.mxu0 %v632_v6 }
  0x5a   : > { %v331_v3 = vld [vmem:[#allocation2] sm:$0xf]  ;;  %vm400_vm5 = vcmp.eq.s32.totalorder %v399_v14, 1 }
  0x5b   : > { %v349_v5 = vsel %vm347_vm2, %v331_v3, 0  ;;  %v379_v7 = vld [vmem:[#allocation2] sm:$0xf]  ;;  %vm401_vm6 = vmor %vm400_vm5, %vm397_vm4 }
  0x5c   : > { %390 = vmatpush.bf16.xpose.msra.mxu1 %v349_v5  ;;  %622 = vmatmul.msk.bf16.vlgmr.msra.gmra.mxu0 %vm347_vm2, %v331_v3 }
  0x63   : > { %624 = vmatmul.msk.bf16.vlgmr.msra.gmra.mxu1 %vm347_vm2, %v379_v7 }
  0xd9   : > { %v360_v17 = vpop.f32.mrf.mxu0 }
  0xda   : > { %v361_v19 = vadd.f32 %v750_v15, %v360_v17 }
  0xdc   : > { %v365_v21 = vmin.f32 %v361_v19, 0.0  ;;  %vm364_vm8 = vcmp.gt.f32.partialorder %v361_v19, 0.0 }
  0xde   : > { %v366_v23 = vmul.f32 1.442695, %v365_v21 }
  0xe0   : > { %v392_v16 = vpop.f32.mrf.mxu1  ;;  %751 = vpow2.f32 %v366_v23 }
  0xe1   : > { %v396_v18 = vmul.f32 0.17677669, %v392_v16  ;;  %v362_v26 = vpop.f32.mrf.mxu0 }
  0xe3   : > { %v402_v20 = vsel %vm401_vm6, %v396_v18, 0.0 }
  0xe4   : > { %v403_v22 = vmul.f32 %v402_v20, %v402_v20 }
  0xe6   : > { %v405_v24 = vsel %vm404_vm7, %v403_v22, 0.0  ;;  %v752_v27 = vpop.eup %751 }
  0xe7   : > { %406 = vadd.xlane.f32.xlu0 %v405_v24  ;;  %v623_v28 = vadd.f32 -1.0, %v752_v27 }
  0xe8   : > { %v394_v25 = vpop.f32.mrf.mxu1 }
  0xe9   : > { %v369_v29 = vsel %vm364_vm8, %v361_v19, %v623_v28 }
  0xea   : > { %v370_v30 = vpack.c.bf16 %v369_v29, %v369_v29 }
  0xec   : > { %372 = vst.msk [vmem:[#allocation4] sm:$0xf] %vm371_vm9, %v370_v30 }
  0xf3   : > { %v421_v31 = vld [vmem:[#allocation4] sm:$0xf] }
  0xf4   : > { %v427_v32 = vsel %vm425_vm10, %v421_v31, 0 }
  0xf5   : > { %436 = vmatpush.bf16.msra.mxu2 %v427_v32 }
 0x15a   : > { %v407_v33 = vpop.xlane.xlu0 %406 }
 0x15b   : > { %v408_v34 = vmax.f32 %v407_v33, 1e-10 }
 0x15d   : > { %753 = vrsqrt.f32 %v408_v34  ;;  %vm415_vm12 = vweird.f32 %v408_v34 }
 0x163   : > { %v754_v35 = vpop.eup %753 }
 0x164   : > { %v410_v36 = vmul.f32 %v754_v35, %v408_v34  ;;  %vm416_vm11 = vweird.f32 %v754_v35 }
 0x165   : > { %vm417_vm13 = vmor %vm415_vm12, %vm416_vm11 }
 0x166   : > { %v411_v37 = vmul.f32 %v754_v35, %v410_v36 }
 0x168   : > { %v412_v38 = vmul.f32 0.5, %v411_v37 }
 0x16a   : > { %v413_v39 = vsub.f32 1.5, %v412_v38 }
 0x16c   : > { %v414_v40 = vmul.f32 %v754_v35, %v413_v39 }
 0x16e   : > { %v418_v41 = vsel %vm417_vm13, %v754_v35, %v414_v40 }
 0x16f   : > { %v419_v42 = vmul.f32 %v418_v41, %v402_v20 }
 0x171   : > { %v420_v43 = vpack.c.bf16 %v419_v42, %v419_v42 }
 0x173   : > { %625 = vmatmul.msk.bf16.vlgmr.msra.gmra.mxu2 %vm404_vm7, %v420_v43 }
 0x1f6   : > { %v438_v45 = vpop.f32.mrf.mxu2 }
 0x1f7   : > { %v442_v46 = vpack.c.bf16 %v438_v45, %v438_v45  ;;  %v445_v47 = vadd.f32 %v444_v44, %v438_v45 }
 0x1f9   : > { %443 = vst.msk [vmem:[#allocation3] sm:$0xf] %vm371_vm9, %v442_v46 }
 0x1fa   : > { %446 = vst.msk [vmem:[#allocation5] sm:$0xff] %vm347_vm2, %v445_v47 }
 0x1fd   : > { %452 = sbr.rel (%p626_p12) target bundleno = 516 (0x204), region = 56 }
 0x1fe   : > { %v440_v48 = vpop.f32.mrf.mxu2 }
 0x200   : > { %v447_v49 = vld [vmem:[#allocation3] sm:$0xf] }
 0x201   : > { %448 = vst.msk [vmem:[#allocation2] sm:$0xf] %vm371_vm9, %v447_v49 }
 0x202   : > { %v453_v50 = vld [vmem:[#allocation5] sm:$0xff] }
 0x203   : > { %454 = vst.msk [vmem:[%s1213_s9] sm:$0xff] %vm347_vm2, %v453_v50 }
 0x204 PF: > { %s1332_s11 = sld [smem:[#allocation19_spill]]  ;;  %s468_s3 = sshll.u32 %s1213_s9, 4  ;;  %s469_s3 = int_to_ptr.vmem [resolvable:$true] %s468_s3 }
 0x205   : > { %s1334_s22 = sld [smem:[#allocation30_spill]]  ;;  %s456_s21 = scalar_lea.sflag [#allocation8], %s1186_s18 }
 0x20a   : > { %s628_s7 = sshll.u32 %s1332_s11, 3 }
 0x20b   : > { %s1335_s4 = smov %s1334_s22  ;;  %s466_s24 = scalar_lea.hbm %s1334_s22, %s628_s7 }
 0x20c   : > { %s470_s20 = sshll.u32 %s466_s24, 4  ;;  %s865_s26 = scalar_lea.hbm %s1335_s4, 16  ;;  %s471_s20 = int_to_ptr.hbm [resolvable:$true] %s470_s20 }
 0x20d   : > { %s859_s25 = sshra.s32 %s471_s20, 4  ;;  %s860_s25 = int_to_ptr.hbm [resolvable:$true] %s859_s25 }
 0x20e   : > { %s861_s14 = scalar_lea.hbm %s860_s25, 8  ;;  %p866_p2 = scmp.lt.s32.totalorder %s860_s25, %s1335_s4 }
 0x20f   : > { %p862_p13 = scmp.ne.s32.totalorder %s860_s25, %s861_s14  ;;  %p867_p6 = scmp.lt.s32.totalorder %s865_s26, %s861_s14 }
 0x211   : > { %p863_p0 = pnand %p862_p13, %p1129_p8  ;;  %p868_p1 = por %p867_p6, %p866_p2 }
 0x213   : > { %p864_p5 = pneg %p863_p0 }
 0x215   : > { %p869_p3 = pnand %p868_p1, %p864_p5 }
 0x217   : > { %872 = shalt.err (!%p869_p3)
}
 0x218   : > { %640 = dma.vmem_to_hbm [thread:$0]  (%p1129_p8), %s469_s3, 128, %s471_s20, %s456_s21  }
 0x219 PF: > { %s1336_s18 = sld [smem:[#allocation21_spill]] }
 0x21a   : > { %s1337_s8 = sld [smem:[#allocation17_spill]] }
 0x21f   : > { %p657_p10 = scmp.ge.s32.totalorder %s1336_s18, 2 }
 0x220   : > { %s482_s9 = sand.u32 1, %s1337_s8  }
 0x221   : > { %p653_p11 = pnand %p657_p10, %p1136_p9  ;;  %s483_s13 = scalar_lea.sflag [#allocation8], %s482_s9 }
 0x223   : > { %p654_p4 = pneg %p653_p11 }
 0x225   : > { %930 = dma.done.wait (%p654_p4), %s483_s13, 128  }
 0x226   : > { %932 = vsyncadd (%p654_p4), %s483_s13, 4294967168  ;;  %s23_s25 = sadd.s32 1, %s1336_s18   ;;  %s1339_s27 = sld [smem:[#allocation24_spill]] }
 0x227   : > { %p20_p7 = scmp.ge.s32.totalorder %s23_s25, 6   ;;  %s1340_s10 = sld [smem:[#allocation18_spill]] }
 0x228   : > { %s1341_s20 = sld [smem:[#allocation25_spill]]  ;;  %s1345_s15 = smov %s939_s16 }
 0x229   : > { %s1342_s22 = sld [smem:[#allocation20_spill]]  ;;  %s1346_s16 = smov %s943_s17 }
 0x22a   : > { %s1343_s11 = sld [smem:[#allocation22_spill]]  ;;  %s1348_s18 = smov %s951_s19 }
 0x22b   : > { %s1344_s24 = sld [smem:[#allocation23_spill]]  ;;  %s1350_s21 = smov %s967_s23 }
 0x22c   : > { %s1347_s17 = smov %s1339_s27  ;;  %22 = sbr.rel (!%p20_p7) target bundleno = 15 (0xf), region = 116 }
 0x22d   : > { %s1349_s19 = smov %s1340_s10 }
 0x230   : > { %s1351_s23 = smov %s1343_s11 }
 0x231   :  { %489 = vsyncpa [#allocation7], 1 }
 0x232   :  { %491 = vsyncpa [#allocation7 + $0x1], 1 }
 0x233   :  { %492 = vsyncpa [#allocation10], 1 }
 0x234   :  { %494 = vsyncpa [#allocation10 + $0x1], 1 }
 0x235   :  { %495 = vsyncpa [#allocation8], 1 }
 0x236   :  { %497 = vsyncpa [#allocation8 + $0x1], 1 }

</bundles_post_ra>
